<compile_context>
chip_gen: v6e
topology: v6e:2x2x1
jax: 0.10.0
libtpu: 0.0.40
codegen_flags: <defaults>
</compile_context>

<pallas_src>
import numpy as np
import jax
import jax.numpy as jnp
from jax.experimental import pallas as pl
from jax.experimental.pallas import tpu as pltpu

MIN_NORM = 1e-15
C_CURV = 1.0
SQRT_C = 1.0
ARTANH_CLAMP = 1.0 - 1e-7


def _round_up(x, m):
    return ((x + m - 1) // m) * m


def _pick_batch_tile(B):
    """Batch tile heuristic.

    Small B: one grid step (fixed overhead dominates anyway).
    Large B: aim for >=4 pipeline steps (and >=2 so v7x's two TensorCores both
    get work) with a tile that is a multiple of 16 rows (clean bf16 sublane
    packing) and small enough that double-buffered I/O fits scoped VMEM.
    """
    if B <= 512:
        return B
    candidates = (1024, 512, 256, 128, 64, 32, 16, 8)
    for min_steps in (4, 2):
        for t in candidates:
            if B % t == 0 and B // t >= min_steps:
                return t
    return B


# ----------------------------------------------------------------------------
# Kernel: logmap0 -> Linear+ReLU -> Linear+ReLU -> fc31 (fused)
# ----------------------------------------------------------------------------
def _make_kernel(Hpad, P):
    def kernel(z_ref, w1t_ref, w2t_ref, w3t_ref, bias_ref, mu_ref):
        z = z_ref[...]                                            # (TB, D) f32

        # --- PoincareBall.logmap0 (elementwise, f32) ------------------------
        zn = jnp.sqrt(jnp.maximum(jnp.sum(z * z, axis=-1, keepdims=True),
                                  MIN_NORM * MIN_NORM))
        zn = jnp.maximum(zn, MIN_NORM)
        x = jnp.minimum(SQRT_C * zn, ARTANH_CLAMP)
        # artanh(x) = 0.5*log((1+x)/(1-x)). Exact divide here: the operand is
        # only (TB,1) and the ratio is ill-conditioned near the clamp.
        artanh = 0.5 * jnp.log((1.0 + x) / (1.0 - x))
        # 1/(sqrt_c*||z||) is well conditioned -> EUP approx reciprocal (free slot).
        z_log = z * (artanh * pl.reciprocal(SQRT_C * zn, approx=True))

        biases = bias_ref[...]                                    # (8, WIDTH) f32
        b1 = biases[0:1, :Hpad]        # lane-aligned, unmasked (Hpad % 128 == 0)
        b2 = biases[1:2, :Hpad]
        b3 = biases[2:3, :P]

        # --- MLP: bf16 matmuls on the MXU, f32 accumulate + elementwise -----
        # Padded hidden columns are exactly zero (zero weights + zero bias,
        # relu(0)=0), so they never contaminate the real outputs.
        h = jnp.dot(z_log.astype(jnp.bfloat16), w1t_ref[...],
                    preferred_element_type=jnp.float32) + b1
        h = jnp.maximum(h, 0.0)
        h = jnp.dot(h.astype(jnp.bfloat16), w2t_ref[...],
                    preferred_element_type=jnp.float32) + b2
        h = jnp.maximum(h, 0.0)
        # True-width (TB, P) store: masked vst, but exactly the useful bytes.
        mu_ref[...] = jnp.dot(h.astype(jnp.bfloat16), w3t_ref[...],
                              preferred_element_type=jnp.float32) + b3

    return kernel


# ----------------------------------------------------------------------------
# Wrapper: parameter packing (glue) + pallas_call
# ----------------------------------------------------------------------------
def decwrapped_sim_forward(z, params, output_dim, *, batch_tile=None):
    W1, b1, W2, b2, W3, b3 = params
    z = z.astype(jnp.float32)
    B, D = z.shape
    H = W1.shape[0]
    P = int(np.prod(output_dim))
    assert W3.shape == (P, H)

    if batch_tile is None:
        batch_tile = _pick_batch_tile(B)
    assert B % batch_tile == 0
    assert batch_tile == B or batch_tile % 8 == 0

    # Pad hidden width to a 128-lane multiple: full-vreg loads / matmul feeds /
    # ReLUs, zero extra MXU cost (N below MXU granularity anyway).
    Hpad = _round_up(H, 128)
    WIDTH = max(Hpad, _round_up(P, 128))

    # bf16 weights (MXU inputs); f32 accumulation inside the kernel.
    w1t = jnp.zeros((D, Hpad), jnp.bfloat16).at[:, :H].set(
        W1.T.astype(jnp.bfloat16))                                # (D, Hpad)
    w2t = jnp.zeros((Hpad, Hpad), jnp.bfloat16).at[:H, :H].set(
        W2.T.astype(jnp.bfloat16))                                # (Hpad, Hpad)
    w3t = jnp.zeros((Hpad, P), jnp.bfloat16).at[:H, :].set(
        W3.T.astype(jnp.bfloat16))                                # (Hpad, P)

    # All bias vectors in one 8-sublane-padded constant block (single DMA,
    # no sub-tile sublane extracts in the kernel).
    bias_pack = jnp.zeros((8, WIDTH), jnp.float32)
    bias_pack = bias_pack.at[0, :H].set(b1)
    bias_pack = bias_pack.at[1, :H].set(b2)
    bias_pack = bias_pack.at[2, :P].set(b3)

    # --- VMEM budget -----------------------------------------------------
    weight_vmem = (D * Hpad + Hpad * Hpad + Hpad * P) * 2         # bf16, 1 copy
    bias_vmem = 8 * WIDTH * 4
    io_vmem = 2 * batch_tile * (D + P) * 4                        # dbl-buffered z + mu
    act_headroom = 4 * batch_tile * Hpad * 4                      # live f32 activations
    # Grid-invariant weights are double-buffered by default; for big hidden
    # dims single-buffer them so v7x's 64 MiB physical VMEM is not blown.
    single_buffer_weights = weight_vmem > (8 << 20)
    weight_bufs = 1 if single_buffer_weights else 2
    vmem_est = weight_bufs * weight_vmem + 2 * bias_vmem + io_vmem + act_headroom
    vmem_limit = int(min(48 << 20, max(16 << 20, 2 * vmem_est)))

    def _const_spec(shape):
        # Grid-invariant blocks (index_map constant) -> not re-DMA'd per step.
        if single_buffer_weights:
            return pl.BlockSpec(shape, lambda i: (0, 0),
                                pipeline_mode=pl.Buffered(1))
        return pl.BlockSpec(shape, lambda i: (0, 0))

    kernel = _make_kernel(Hpad, P)

    grid_spec = pltpu.PrefetchScalarGridSpec(
        num_scalar_prefetch=0,
        grid=(B // batch_tile,),
        in_specs=[
            pl.BlockSpec((batch_tile, D), lambda i: (i, 0)),      # z
            _const_spec((D, Hpad)),                               # W1^T (padded)
            _const_spec((Hpad, Hpad)),                            # W2^T (padded)
            _const_spec((Hpad, P)),                               # W3^T (padded rows)
            _const_spec((8, WIDTH)),                              # packed biases
        ],
        out_specs=pl.BlockSpec((batch_tile, P), lambda i: (i, 0)),
    )

    cost = pl.CostEstimate(
        flops=2 * B * (D * H + H * H + H * P),
        transcendentals=3 * B,                                    # sqrt + log + recip / row
        bytes_accessed=B * (D + P) * 4
        + (D * Hpad + Hpad * Hpad + Hpad * P) * 2 + 8 * WIDTH * 4,
    )

    mu = pl.pallas_call(
        kernel,
        out_shape=jax.ShapeDtypeStruct((B, P), jnp.float32),
        grid_spec=grid_spec,
        compiler_params=pltpu.CompilerParams(
            dimension_semantics=("parallel",),
            vmem_limit_bytes=vmem_limit),
        cost_estimate=cost,
    )(z, w1t, w2t, w3t, bias_pack)

    # Scalar output_dim (as in the PyTorch module's .view(..., self.output_dim)).
    mu = mu.reshape((B, int(output_dim)))
    return mu, jnp.ones_like(mu)


# ----------------------------------------------------------------------------
# Pure-JAX reference (literal port of the PyTorch forward) for verification
# ----------------------------------------------------------------------------
def decwrapped_sim_reference(z, params, output_dim, c=C_CURV):
    W1, b1, W2, b2, W3, b3 = params
    sqrt_c = c ** 0.5
    zn = jnp.maximum(jnp.linalg.norm(z, axis=-1, keepdims=True), MIN_NORM)
    x = jnp.minimum(sqrt_c * zn, ARTANH_CLAMP)
    z_log = jnp.arctanh(x) * z / (sqrt_c * zn)
    h = jax.nn.relu(z_log @ W1.T + b1)
    h = jax.nn.relu(h @ W2.T + b2)
    mu = (h @ W3.T + b3).reshape(z.shape[:-1] + (int(output_dim),))
    return mu, jnp.ones_like(mu)


# ----------------------------------------------------------------------------
if __name__ == "__main__":
    B, D, H = 16, 8, 32          # batch, manifold.coord_dim, hidden_dim
    output_dim = 16              # DecWrappedSim.output_dim (scalar)
    P = int(np.prod(output_dim))

    key = jax.random.PRNGKey(0)
    ks = jax.random.split(key, 7)

    # latent points z inside the Poincare ball (norm < 1)
    z_raw = jax.random.normal(ks[0], (B, D), jnp.float32)
    z = 0.7 * z_raw / (1.0 + jnp.linalg.norm(z_raw, axis=-1, keepdims=True))

    # deterministic synthetic parameters (shapes from the module __init__)
    W1 = 0.3 * jax.random.normal(ks[1], (H, D), jnp.float32)   # dec[0]: Linear(D, H)
    b1 = 0.1 * jax.random.normal(ks[2], (H,), jnp.float32)
    W2 = 0.2 * jax.random.normal(ks[3], (H, H), jnp.float32)   # extra hidden layer
    b2 = 0.1 * jax.random.normal(ks[4], (H,), jnp.float32)
    W3 = 0.2 * jax.random.normal(ks[5], (P, H), jnp.float32)   # fc31
    b3 = 0.1 * jax.random.normal(ks[6], (P,), jnp.float32)

    params = (W1, b1, W2, b2, W3, b3)

    mu, var = decwrapped_sim_forward(z, params, output_dim)
    jax.block_until_ready(mu)

    mu_ref, var_ref = decwrapped_sim_reference(z, params, output_dim)
    assert mu.shape == (B, output_dim), mu.shape
    assert var.shape == mu.shape
    np.testing.assert_allclose(np.asarray(mu), np.asarray(mu_ref),
                               rtol=2e-2, atol=2e-2)
    np.testing.assert_allclose(np.asarray(var), np.ones_like(np.asarray(mu_ref)))

    print("KERNEL_OK")
</pallas_src>

<mosaic_0001>
module attributes {stable_mosaic.version = 11 : i64} {
  func.func @kernel(%arg0: i32, %arg1: memref<16x8xf32, #tpu.memory_space<vmem>>, %arg2: memref<8x128xbf16, #tpu.memory_space<vmem>>, %arg3: memref<128x128xbf16, #tpu.memory_space<vmem>>, %arg4: memref<128x16xbf16, #tpu.memory_space<vmem>>, %arg5: memref<8x128xf32, #tpu.memory_space<vmem>>, %arg6: memref<16x16xf32, #tpu.memory_space<vmem>>) attributes {dimension_semantics = [#tpu.dimension_semantics<parallel>], iteration_bounds = array<i64: 1>, scalar_prefetch = 0 : i64, scratch_operands = 0 : i64, tpu.core_type = #tpu.core_type<tc>, window_params = [{transform_indices = @transform_0, window_bounds = array<i64: 16, 8>}, {pipeline_mode = #tpu.pipeline_mode<synchronous>, transform_indices = @transform_1, window_bounds = array<i64: 8, 128>}, {pipeline_mode = #tpu.pipeline_mode<synchronous>, transform_indices = @transform_2, window_bounds = array<i64: 128, 128>}, {pipeline_mode = #tpu.pipeline_mode<synchronous>, transform_indices = @transform_3, window_bounds = array<i64: 128, 16>}, {pipeline_mode = #tpu.pipeline_mode<synchronous>, transform_indices = @transform_4, window_bounds = array<i64: 8, 128>}, {transform_indices = @transform_5, window_bounds = array<i64: 16, 16>}]} {
    %c0 = arith.constant 0 : index
    %c0_0 = arith.constant 0 : index
    %0 = vector.load %arg1[%c0, %c0_0] : memref<16x8xf32, #tpu.memory_space<vmem>>, vector<16x8xf32>
    %1 = arith.mulf %0, %0 : vector<16x8xf32>
    %cst = arith.constant dense<0.000000e+00> : vector<16xf32>
    %2 = vector.multi_reduction <add>, %1, %cst [1] : vector<16x8xf32> to vector<16xf32>
    %3 = vector.shape_cast %2 : vector<16xf32> to vector<16x1xf32>
    %cst_1 = arith.constant 1.000000e-30 : f32
    %4 = vector.broadcast %cst_1 : f32 to vector<16x1xf32>
    %5 = arith.maximumf %3, %4 : vector<16x1xf32>
    %6 = math.sqrt %5 : vector<16x1xf32>
    %cst_2 = arith.constant 1.000000e-15 : f32
    %7 = vector.broadcast %cst_2 : f32 to vector<16x1xf32>
    %8 = arith.maximumf %6, %7 : vector<16x1xf32>
    %cst_3 = arith.constant 1.000000e+00 : f32
    %9 = vector.broadcast %cst_3 : f32 to vector<16x1xf32>
    %10 = arith.mulf %9, %8 : vector<16x1xf32>
    %cst_4 = arith.constant 0.99999988 : f32
    %11 = vector.broadcast %cst_4 : f32 to vector<16x1xf32>
    %12 = arith.minimumf %10, %11 : vector<16x1xf32>
    %cst_5 = arith.constant 1.000000e+00 : f32
    %13 = vector.broadcast %cst_5 : f32 to vector<16x1xf32>
    %14 = arith.addf %13, %12 : vector<16x1xf32>
    %cst_6 = arith.constant 1.000000e+00 : f32
    %15 = vector.broadcast %cst_6 : f32 to vector<16x1xf32>
    %16 = arith.subf %15, %12 : vector<16x1xf32>
    %17 = arith.divf %14, %16 : vector<16x1xf32>
    %18 = math.log %17 : vector<16x1xf32>
    %cst_7 = arith.constant 5.000000e-01 : f32
    %19 = vector.broadcast %cst_7 : f32 to vector<16x1xf32>
    %20 = arith.mulf %19, %18 : vector<16x1xf32>
    %cst_8 = arith.constant 1.000000e+00 : f32
    %21 = vector.broadcast %cst_8 : f32 to vector<16x1xf32>
    %22 = arith.mulf %21, %8 : vector<16x1xf32>
    %23 = tpu.reciprocal %22 {approx = true} : vector<16x1xf32> -> vector<16x1xf32>
    %24 = arith.mulf %20, %23 : vector<16x1xf32>
    %25 = vector.broadcast %24 : vector<16x1xf32> to vector<16x8xf32>
    %26 = arith.mulf %0, %25 : vector<16x8xf32>
    %c0_9 = arith.constant 0 : index
    %c0_10 = arith.constant 0 : index
    %27 = vector.load %arg5[%c0_9, %c0_10] : memref<8x128xf32, #tpu.memory_space<vmem>>, vector<8x128xf32>
    %28 = vector.extract_strided_slice %27 {offsets = [0, 0], sizes = [1, 128], strides = [1, 1]} : vector<8x128xf32> to vector<1x128xf32>
    %29 = vector.extract_strided_slice %27 {offsets = [1, 0], sizes = [1, 128], strides = [1, 1]} : vector<8x128xf32> to vector<1x128xf32>
    %30 = vector.extract_strided_slice %27 {offsets = [2, 0], sizes = [1, 16], strides = [1, 1]} : vector<8x128xf32> to vector<1x16xf32>
    %31 = arith.truncf %26 : vector<16x8xf32> to vector<16x8xbf16>
    %c0_11 = arith.constant 0 : index
    %c0_12 = arith.constant 0 : index
    %32 = vector.load %arg2[%c0_11, %c0_12] : memref<8x128xbf16, #tpu.memory_space<vmem>>, vector<8x128xbf16>
    %cst_13 = arith.constant dense<0.000000e+00> : vector<16x128xf32>
    %33 = tpu.matmul %31, %32, %cst_13 {dimension_numbers = #tpu.dot_dimension_numbers<[1], [0], [0], [1], [0, 0, 1, 1], [], []>} : vector<16x8xbf16>, vector<8x128xbf16>, vector<16x128xf32> -> vector<16x128xf32>
    %34 = vector.broadcast %28 : vector<1x128xf32> to vector<16x128xf32>
    %35 = arith.addf %33, %34 : vector<16x128xf32>
    %cst_14 = arith.constant 0.000000e+00 : f32
    %36 = vector.broadcast %cst_14 : f32 to vector<16x128xf32>
    %37 = arith.maximumf %35, %36 : vector<16x128xf32>
    %38 = arith.truncf %37 : vector<16x128xf32> to vector<16x128xbf16>
    %c0_15 = arith.constant 0 : index
    %c0_16 = arith.constant 0 : index
    %39 = vector.load %arg3[%c0_15, %c0_16] : memref<128x128xbf16, #tpu.memory_space<vmem>>, vector<128x128xbf16>
    %cst_17 = arith.constant dense<0.000000e+00> : vector<16x128xf32>
    %40 = tpu.matmul %38, %39, %cst_17 {dimension_numbers = #tpu.dot_dimension_numbers<[1], [0], [0], [1], [0, 0, 1, 1], [], []>} : vector<16x128xbf16>, vector<128x128xbf16>, vector<16x128xf32> -> vector<16x128xf32>
    %41 = vector.broadcast %29 : vector<1x128xf32> to vector<16x128xf32>
    %42 = arith.addf %40, %41 : vector<16x128xf32>
    %cst_18 = arith.constant 0.000000e+00 : f32
    %43 = vector.broadcast %cst_18 : f32 to vector<16x128xf32>
    %44 = arith.maximumf %42, %43 : vector<16x128xf32>
    %45 = arith.truncf %44 : vector<16x128xf32> to vector<16x128xbf16>
    %c0_19 = arith.constant 0 : index
    %c0_20 = arith.constant 0 : index
    %46 = vector.load %arg4[%c0_19, %c0_20] : memref<128x16xbf16, #tpu.memory_space<vmem>>, vector<128x16xbf16>
    %cst_21 = arith.constant dense<0.000000e+00> : vector<16x16xf32>
    %47 = tpu.matmul %45, %46, %cst_21 {dimension_numbers = #tpu.dot_dimension_numbers<[1], [0], [0], [1], [0, 0, 1, 1], [], []>} : vector<16x128xbf16>, vector<128x16xbf16>, vector<16x16xf32> -> vector<16x16xf32>
    %48 = vector.broadcast %30 : vector<1x16xf32> to vector<16x16xf32>
    %49 = arith.addf %47, %48 : vector<16x16xf32>
    %c0_22 = arith.constant 0 : index
    %c0_23 = arith.constant 0 : index
    %50 = vector.load %arg6[%c0_22, %c0_23] : memref<16x16xf32, #tpu.memory_space<vmem>>, vector<16x16xf32>
    tpu.vector_store %arg6[%c0_22, %c0_23], %49 {strides = array<i32>} : memref<16x16xf32, #tpu.memory_space<vmem>>, vector<16x16xf32>,
    return
  }
  func.func @transform_0(%arg0: i32) -> (i32, i32) {
    %c0_i32 = arith.constant 0 : i32
    %c0_i32_0 = arith.constant 0 : i32
    return %arg0, %c0_i32 : i32, i32
  }
  func.func @transform_1(%arg0: i32) -> (i32, i32) {
    %c0_i32 = arith.constant 0 : i32
    %c0_i32_0 = arith.constant 0 : i32
    %c0_i32_1 = arith.constant 0 : i32
    return %c0_i32, %c0_i32_0 : i32, i32
  }
  func.func @transform_2(%arg0: i32) -> (i32, i32) {
    %c0_i32 = arith.constant 0 : i32
    %c0_i32_0 = arith.constant 0 : i32
    %c0_i32_1 = arith.constant 0 : i32
    return %c0_i32, %c0_i32_0 : i32, i32
  }
  func.func @transform_3(%arg0: i32) -> (i32, i32) {
    %c0_i32 = arith.constant 0 : i32
    %c0_i32_0 = arith.constant 0 : i32
    %c0_i32_1 = arith.constant 0 : i32
    return %c0_i32, %c0_i32_0 : i32, i32
  }
  func.func @transform_4(%arg0: i32) -> (i32, i32) {
    %c0_i32 = arith.constant 0 : i32
    %c0_i32_0 = arith.constant 0 : i32
    %c0_i32_1 = arith.constant 0 : i32
    return %c0_i32, %c0_i32_0 : i32, i32
  }
  func.func @transform_5(%arg0: i32) -> (i32, i32) {
    %c0_i32 = arith.constant 0 : i32
    %c0_i32_0 = arith.constant 0 : i32
    return %arg0, %c0_i32 : i32, i32
  }
}

</mosaic_0001>

<bundles_post_ra>
// kernel: tpu_custom_call.1
= control target key start
LH: loop header
LB: loop body
LE: loop exit
PB: predicated region body
PF: predicated region fallthrough
CT: control target
= control target key end

     0   :  { %vm26_vm0 = vcmask 64512   ;;  %s647_s0 = inlined_call_operand.vmem [shape: f32[16,8], index: 0, kind: input, shape index: {}]   ;;  %s648_s1 = inlined_call_operand.vmem [shape: bf16[8,128], index: 1, kind: input, shape index: {}]   ;;  %s649_s2 = inlined_call_operand.vmem [shape: bf16[128,128], index: 2, kind: input, shape index: {}]   ;;  %s650_s3 = inlined_call_operand.vmem [shape: bf16[128,16], index: 3, kind: input, shape index: {}]   ;;  %s651_s4 = inlined_call_operand.vmem [shape: f32[8,128], index: 4, kind: input, shape index: {}]   ;;  %s652_s5 = inlined_call_operand.hbm [shape: f32[16,16], index: 5, kind: output, shape index: {}]  }
   0x1   :  { %v551_v0 = vld [vmem:[%s647_s0] sm:$0xff]  ;;  %v556_v1 = vld [vmem:[%s647_s0 + $0x8] sm:$0xff] }
   0x2   :  { %v24_v2 = vmul.f32 %v551_v0, %v551_v0  ;;  %v25_v3 = vmul.f32 %v556_v1, %v556_v1 }
   0x4   :  { %v27_v4 = vsel %vm26_vm0, %v24_v2, 0.0  ;;  %v30_v5 = vsel %vm26_vm0, %v25_v3, 0.0 }
   0x5   :  { %28 = vadd.xlane.f32.xlu0 %v27_v4 }
   0x9   :  { %31 = vadd.xlane.f32.xlu0 %v30_v5 }
   0xa   :  { %10 = vsyncpa [#allocation3], 0  ;;  %v75_v6 = vld [vmem:[%s648_s1] sm:$0xf]  ;;  %vm83_vm1 = vcmask 1043456   ;;  %v513_v7 = vmov 0.0   ;;  %v76_v61 = vlaneseq }
   0xb   :  { %408 = vmatprep.subr.bf16.mxu0 %v513_v7  ;;  %v85_v8 = vsel %vm83_vm1, %v75_v6, 0  ;;  %vm514_vm2 = vmmov 0   ;;  %414 = vmatprep.subr.bf16.mxu1 %v513_v7  ;;  %v459_v9 = vld [vmem:[%s649_s2 + $0x38] sm:$0xff]   ;;  %v460_v10 = vld [vmem:[%s649_s2 + $0x30] sm:$0xff]   ;;  %v461_v11 = vld [vmem:[%s649_s2 + $0x28] sm:$0xff]   ;;  %vm352_vm7 = vcmask 130048  }
   0xc   :  { %410 = vmatprep.mubr.msk.bf16.mxu0 %vm514_vm2, %v513_v7  ;;  %409 = vmatpush3.bf16.msra.mxu0 %v85_v8  ;;  %v462_v12 = vld [vmem:[%s649_s2 + $0x20] sm:$0xff]   ;;  %v463_v13 = vld [vmem:[%s649_s2 + $0x18] sm:$0xff]   ;;  %v464_v53 = vld [vmem:[%s649_s2 + $0x10] sm:$0xff]   ;;  %v77_v62 = vshrl.u32 %v76_v61, 7 }
   0xd   :  { %430 = vmatprep.mubr.msk.bf16.mxu1 %vm514_vm2, %v513_v7  ;;  %434 = vmatprep.subr.bf16.mxu0 %v513_v7  ;;  %v465_v54 = vld [vmem:[%s649_s2 + $0x8] sm:$0xff]   ;;  %v466_v55 = vld [vmem:[%s649_s2] sm:$0xff]   ;;  %v467_v56 = vld [vmem:[%s650_s3 + $0x38] sm:$0xff]  }
   0xe   :  { %415 = vmatpush3.bf16.msra.mxu1 %v459_v9  ;;  %v468_v57 = vld [vmem:[%s650_s3 + $0x30] sm:$0xff]   ;;  %v469_v58 = vld [vmem:[%s650_s3 + $0x28] sm:$0xff]   ;;  %v470_v59 = vld [vmem:[%s650_s3 + $0x20] sm:$0xff]   ;;  %v78_v63 = vsub.s32 0, %v77_v62 }
   0xf   :  { %416 = vmatprep.subr.bf16.mxu1 %v513_v7  ;;  %v471_v60 = vld [vmem:[%s650_s3 + $0x18] sm:$0xff]  }
  0x12   :  { %417 = vmatpush3.bf16.msra.mxu1 %v460_v10 }
  0x13   :  { %418 = vmatprep.subr.bf16.mxu1 %v513_v7 }
  0x16   :  { %419 = vmatpush3.bf16.msra.mxu1 %v461_v11 }
  0x17   :  { %420 = vmatprep.subr.bf16.mxu1 %v513_v7 }
  0x1a   :  { %421 = vmatpush3.bf16.msra.mxu1 %v462_v12  ;;  %v472_v12 = vld [vmem:[%s650_s3 + $0x10] sm:$0xff]  }
  0x1b   :  { %422 = vmatprep.subr.bf16.mxu1 %v513_v7 }
  0x1e   :  { %423 = vmatpush3.bf16.msra.mxu1 %v463_v13  ;;  %v473_v13 = vld [vmem:[%s650_s3 + $0x8] sm:$0xff]  }
  0x1f   :  { %424 = vmatprep.subr.bf16.mxu1 %v513_v7 }
  0x22   :  { %425 = vmatpush3.bf16.msra.mxu1 %v464_v53 }
  0x23   :  { %426 = vmatprep.subr.bf16.mxu1 %v513_v7 }
  0x26   :  { %427 = vmatpush3.bf16.msra.mxu1 %v465_v54 }
  0x27   :  { %428 = vmatprep.subr.bf16.mxu1 %v513_v7 }
  0x2a   :  { %429 = vmatpush3.bf16.msra.mxu1 %v466_v55 }
  0x8e   :  { %v29_v14 = vpop.xlane.xlu0 %28 }
  0x8f   :  { %v33_v15 = vmax.f32 %v29_v14, 1e-30  ;;  %v474_v14 = vld [vmem:[%s650_s3] sm:$0xff]   ;;  %s515_s3 = smov [#allocation2]  }
  0x90   :  { %s360_s27 = sshll.u32 %s515_s3, 4  ;;  %s361_s27 = int_to_ptr.vmem [resolvable:$true] %s360_s27 }
  0x91   :  { %475 = vrsqrt.f32 %v33_v15  ;;  %vm37_vm3 = vcmp.eq.f32.partialorder %v33_v15, inf  ;;  %v40_v20 = vand.u32 2147483648, %v33_v15  ;;  %vm39_vm4 = vcmp.eq.f32.partialorder %v33_v15, 0.0  ;;  %s491_s28 = scalar_lea.vmem %s361_s27, 256  ;;  %p496_p1 = scmp.lt.s32.totalorder %s361_s27, %s361_s27 }
  0x92   :  { %v32_v16 = vpop.xlane.xlu0 %31  ;;  %p492_p0 = scmp.ne.s32.totalorder %s361_s27, %s491_s28  ;;  %p497_p2 = scmp.lt.s32.totalorder %s491_s28, %s491_s28 }
  0x93   :  { %v34_v17 = vmax.f32 %v32_v16, 1e-30 }
  0x94   :  { %p498_p3 = por %p497_p2, %p496_p1 }
  0x95   :  { %477 = vrsqrt.f32 %v34_v17  ;;  %vm44_vm5 = vcmp.eq.f32.partialorder %v34_v17, inf  ;;  %v47_v26 = vand.u32 2147483648, %v34_v17  ;;  %vm46_vm6 = vcmp.eq.f32.partialorder %v34_v17, 0.0 }
  0x96   :  { %p499_p4 = pnand %p498_p3, %p492_p0 }
  0x9e   :  { %v476_v18 = vpop.eup %475 }
  0x9f   :  { %v36_v19 = vmul.f32 %v476_v18, %v33_v15 }
  0xa1   :  { %v38_v21 = vsel %vm37_vm3, %v33_v15, %v36_v19  ;;  %v149_v15 = vsub.s32 1, %v77_v62 }
  0xa2   :  { %v478_v22 = vpop.eup %477  ;;  %v41_v23 = vsel %vm39_vm4, %v40_v20, %v38_v21 }
  0xa3   :  { %v49_v24 = vmax.f32 %v41_v23, 1e-15  ;;  %v43_v25 = vmul.f32 %v478_v22, %v34_v17 }
  0xa5   :  { %v45_v27 = vsel %vm44_vm5, %v34_v17, %v43_v25  ;;  %v51_v28 = vmin.f32 %v49_v24, 0.9999999 }
  0xa6   :  { %v48_v29 = vsel %vm46_vm6, %v47_v26, %v45_v27  ;;  %v261_v26 = vsub.s32 2, %v77_v62 }
  0xa7   :  { %v50_v30 = vmax.f32 %v48_v29, 1e-15  ;;  %v55_v31 = vsub.f32 1.0, %v51_v28  ;;  %v53_v34 = vadd.f32 1.0, %v51_v28 }
  0xa9   :  { %v52_v32 = vmin.f32 %v50_v30, 0.9999999  ;;  %479 = vrcp.f32 %v55_v31 }
  0xab   :  { %v56_v33 = vsub.f32 1.0, %v52_v32  ;;  %v54_v37 = vadd.f32 1.0, %v52_v32 }
  0xad   :  { %481 = vrcp.f32 %v56_v33 }
  0xb6   :  { %v480_v35 = vpop.eup %479 }
  0xb7   :  { %v58_v36 = vmul.f32 %v480_v35, %v53_v34 }
  0xb9   :  { %483 = vlog2.f32 %v58_v36 }
  0xba   :  { %v482_v38 = vpop.eup %481 }
  0xbb   :  { %v60_v39 = vmul.f32 %v482_v38, %v54_v37 }
  0xbd   :  { %485 = vlog2.f32 %v60_v39 }
  0xbe   :  { %487 = vrcp.f32 %v49_v24 }
  0xbf   :  { %489 = vrcp.f32 %v50_v30 }
  0xc6   :  { %v484_v40 = vpop.eup %483 }
  0xc7   :  { %v62_v41 = vmul.f32 0.6931472, %v484_v40 }
  0xc9   :  { %v65_v43 = vmul.f32 0.5, %v62_v41 }
  0xca   :  { %v486_v42 = vpop.eup %485 }
  0xcb   :  { %v64_v44 = vmul.f32 0.6931472, %v486_v42  ;;  %v488_v45 = vpop.eup %487 }
  0xcc   :  { %v69_v47 = vmul.f32 %v488_v45, %v65_v43  ;;  %v490_v48 = vpop.eup %489 }
  0xcd   :  { %v66_v46 = vmul.f32 0.5, %v64_v44 }
  0xce   :  { %v71_v50 = vmul.f32 %v69_v47, %v551_v0  ;;  %v73_v0 = vld [vmem:[%s651_s4] sm:$0xff] }
  0xcf   :  { %v70_v49 = vmul.f32 %v490_v48, %v66_v46  ;;  %v150_v16 = vrot.slane %v73_v0, %v149_v15  ;;  %v262_v27 = vrot.slane %v73_v0, %v261_v26 }
  0xd1   :  { %v72_v51 = vmul.f32 %v70_v49, %v556_v1  ;;  %v79_v1 = vrot.slane %v73_v0, %v78_v63 }
  0xd3   :  { %v74_v52 = vpack.c.bf16 %v72_v51, %v71_v50 }
  0xd5   :  { %411 = vmatmul.mubr.msk.bf16.vlgmr.msra.gmra.mxu0 %vm26_vm0, %v74_v52 }
  0xd6   :  { %450 = vmatprep.mubr.msk.bf16.mxu0 %vm514_vm2, %v513_v7  ;;  %435 = vmatpush3.bf16.msra.mxu0 %v467_v56 }
  0xd7   :  { %436 = vmatprep.subr.bf16.mxu0 %v513_v7 }
  0xda   :  { %437 = vmatpush3.bf16.msra.mxu0 %v468_v57 }
  0xdb   :  { %438 = vmatprep.subr.bf16.mxu0 %v513_v7 }
  0xde   :  { %439 = vmatpush3.bf16.msra.mxu0 %v469_v58 }
  0xdf   :  { %440 = vmatprep.subr.bf16.mxu0 %v513_v7 }
  0xe2   :  { %441 = vmatpush3.bf16.msra.mxu0 %v470_v59 }
  0xe3   :  { %442 = vmatprep.subr.bf16.mxu0 %v513_v7 }
  0xe6   :  { %443 = vmatpush3.bf16.msra.mxu0 %v471_v60 }
  0xe7   :  { %444 = vmatprep.subr.bf16.mxu0 %v513_v7 }
  0xea   :  { %445 = vmatpush3.bf16.msra.mxu0 %v472_v12 }
  0xeb   :  { %446 = vmatprep.subr.bf16.mxu0 %v513_v7 }
  0xee   :  { %447 = vmatpush3.bf16.msra.mxu0 %v473_v13 }
  0xef   :  { %448 = vmatprep.subr.bf16.mxu0 %v513_v7 }
  0xf2   :  { %449 = vmatpush3.bf16.msra.mxu0 %v474_v14 }
 0x195   :  { %v121_v2 = vpop.f32.mrf.mxu0 }
 0x196   :  { %v122_v4 = vadd.f32 %v121_v2, %v79_v1 }
 0x197   :  { %v412_v3 = vpop.f32.mrf.mxu0 }
 0x198   :  { %v128_v9 = vmax.f32 %v122_v4, 0.0 }
 0x199   :  { %v124_v5 = vpop.f32.mrf.mxu0 }
 0x19a   :  { %v125_v6 = vadd.f32 %v124_v5, %v79_v1 }
 0x19b   :  { %v413_v8 = vpop.f32.mrf.mxu0 }
 0x19c   :  { %v129_v10 = vmax.f32 %v125_v6, 0.0 }
 0x19e   :  { %v130_v11 = vpack.c.bf16 %v129_v10, %v128_v9 }
 0x1a0   :  { %431 = vmatmul.mubr.bf16.vlgmr.msra.gmra.mxu1 %v130_v11 }
 0x260   :  { %v233_v17 = vpop.f32.mrf.mxu1 }
 0x261   :  { %v234_v19 = vadd.f32 %v233_v17, %v150_v16 }
 0x262   :  { %v432_v18 = vpop.f32.mrf.mxu1 }
 0x263   :  { %v240_v23 = vmax.f32 %v234_v19, 0.0 }
 0x264   :  { %v236_v20 = vpop.f32.mrf.mxu1 }
 0x265   :  { %v237_v21 = vadd.f32 %v236_v20, %v150_v16 }
 0x266   :  { %v433_v22 = vpop.f32.mrf.mxu1 }
 0x267   :  { %v241_v24 = vmax.f32 %v237_v21, 0.0 }
 0x269   :  { %v242_v25 = vpack.c.bf16 %v241_v24, %v240_v23 }
 0x26b   :  { %451 = vmatmul.mubr.bf16.vlgmr.msra.gmra.mxu0 %v242_v25 }
 0x32b   :  { %v345_v7 = vpop.f32.mrf.mxu0 }
 0x32c   :  { %v346_v28 = vadd.f32 %v345_v7, %v262_v27 }
 0x32d   :  { %v452_v29 = vpop.f32.mrf.mxu0 }
 0x32e   :  { %353 = vst.msk [vmem:[#allocation2] sm:$0xff] %vm352_vm7, %v346_v28 }
 0x32f   :  { %v348_v30 = vpop.f32.mrf.mxu0 }
 0x330   :  { %v349_v31 = vadd.f32 %v348_v30, %v262_v27 }
 0x331   :  { %v453_v32 = vpop.f32.mrf.mxu0 }
 0x332   :  { %354 = vst.msk [vmem:[#allocation2 + $0x8] sm:$0xff] %vm352_vm7, %v349_v31 }
 0x333   :  { %502 = shalt.err (!%p499_p4)
}
 0x334   :  { %s516_s29 = smov 128   ;;  %s517_s30 = smov 8  }
 0x335   :  { %366 = dma.vmem_to_hbm [thread:$0]  %s361_s27, 256, %s652_s5, [#allocation3], %s516_s29, %s516_s29, %s517_s30  }
 0x336   :  { %511 = dma.done.wait [#allocation3], 256  }
 0x337   :  { %512 = vsyncadd [#allocation3], 4294967040 }
 0x338   :  { %370 = vsyncpa [#allocation3], 1 }

</bundles_post_ra>
